<compile_context>
chip_gen: v7x
topology: tpu7x:2x2x1
jax: 0.10.0
libtpu: 0.0.40
codegen_flags: <defaults>
</compile_context>

<pallas_src>
import functools

import jax
import jax.numpy as jnp
from jax.experimental import pallas as pl
from jax.experimental.pallas import tpu as pltpu


def _cdiv(a, b):
    return (a + b - 1) // b


def _round_up(a, b):
    return _cdiv(a, b) * b


def _vmem_limit_bytes():
    """Per-chip scoped-VMEM limit: ~48 MiB on v7x (64 MiB phys), 96 MiB on
    v5e/v6e (128 MiB phys); conservative fallback if the query fails."""
    cap = 64 * 1024 * 1024
    try:
        info_cap = int(getattr(pltpu.get_tpu_info(), "vmem_capacity_bytes", 0))
        if info_cap > 0:
            cap = info_cap
    except Exception:  # pragma: no cover - defensive, fallback is safe
        pass
    return min(96 * 1024 * 1024, (cap * 3) // 4)


_VMEM_LIMIT = _vmem_limit_bytes()


def _ce_loss_kernel(n_valid, xi_ref, w_ref, mask_ref, tgt_ref, out_ref):
    # xi_ref:   [TN, F_pad]  f32  (rows feeding out[:, -L:, :], + ones column)
    # w_ref:    [F_pad, C]   f32  (bias folded in as an extra row)
    # mask_ref: [TN, C]      f32  (masked_output, flat view, no padding)
    # tgt_ref:  [TN, 1]      i32  (class targets)
    # out_ref:  [1, 1, 128]  f32  (per-tile partial sum of NLL, replicated)
    tn, c = mask_ref.shape

    # Linear "model" head on the MXU (f32 accumulation).  K (= F_pad) is tiny;
    # the MXU slot is nowhere near binding, so no further tuning here.
    logits = jnp.dot(xi_ref[...], w_ref[...],
                     preferred_element_type=jnp.float32)          # [TN, C]

    # out[:, -L:, :] * masked_output  (f32 VPU math).
    masked = logits * mask_ref[...]                               # [TN, C]

    # Row-wise numerically stable log-sum-exp.  Reductions are over the
    # *logical* class dim; Mosaic masks the internal lane padding itself.
    row_max = jnp.max(masked, axis=-1, keepdims=True)             # [TN, 1]
    lse = jnp.log(jnp.sum(jnp.exp(masked - row_max), axis=-1,
                          keepdims=True)) + row_max               # [TN, 1]

    # Target-class logit via an iota/compare pick (no gather on TPU).
    col = jax.lax.broadcasted_iota(jnp.int32, (tn, c), 1)         # [TN, C]
    picked = jnp.sum(jnp.where(col == tgt_ref[...], masked, 0.0),
                     axis=-1, keepdims=True)                      # [TN, 1]

    nll = lse - picked                                            # [TN, 1]

    # Zero rows of the (possibly partial) last tile.
    row0 = pl.program_id(0) * tn
    rows = row0 + jax.lax.broadcasted_iota(jnp.int32, (tn, 1), 0)
    nll = jnp.where(rows < n_valid, nll, jnp.float32(0.0))

    partial = jnp.sum(nll)                                        # scalar f32
    out_ref[...] = jnp.broadcast_to(partial, out_ref.shape)


@functools.partial(jax.jit, static_argnames=("latent_len",))
def autoregressive_forward_loss(x, masked_output, W, b, *, latent_len):
    """Pallas implementation of AutoRegressiveWrapper.forward.

    x:             [B, 2*L+1, F] float32
    masked_output: [B, L, C] float32  (C == L, number of node classes)
    W:             [F, C] float32
    b:             [1, C] float32
    Returns scalar float32 loss.
    """
    B, S, F_ = x.shape
    L = latent_len
    C = W.shape[1]
    assert S == 2 * L + 1, "sequence length must be 2*latent_len + 1"
    N = B * L

    # --- row-tile sizing ---------------------------------------------------
    # Per (row, lane-padded class) the kernel holds several live f32
    # temporaries (logits/masked/exp/iota) plus the double-buffered f32 mask
    # tile: budget ~48 B/elem and use half the scoped VMEM limit.
    C_lane = _round_up(C, 128)
    bytes_per_row = 48 * C_lane
    tn_vmem = (_VMEM_LIMIT // 2) // bytes_per_row
    TN = max(8, min(2048, (tn_vmem // 8) * 8))
    if N > 8:
        # Guarantee >= 2 row tiles so the "parallel" grid axis feeds both
        # TensorCores on v7x (no-op on v5e/v6e).
        TN = min(TN, _round_up(_cdiv(N, 2), 8))
    TN = min(TN, _round_up(N, 8))
    num_tiles = _cdiv(N, TN)

    # --- small prep (only tiny arrays are copied) ---------------------------
    # The [N, C] mask goes into the kernel as f32 through a free contiguous
    # reshape: no pad, no cast, no extra HBM pass.
    mask2d = masked_output.reshape(N, C)

    # xi = x[:, :-1]; out = model(xi)[0]; out[:, -L:, :] == projection of
    # x[:, L:2L, :] for a per-position head.  [N, F+1] is tiny (F ~ 4).
    F_aug = F_ + 1
    F_pad = _round_up(F_aug, 8)
    xi = x[:, L:2 * L, :].reshape(N, F_)
    xi = jnp.concatenate([xi, jnp.ones((N, 1), x.dtype)], axis=-1)  # bias col
    xi = jnp.pad(xi, ((0, 0), (0, F_pad - F_aug)))

    W_aug = jnp.concatenate([W, b.reshape(1, C)], axis=0)           # [F+1, C]
    W_aug = jnp.pad(W_aug, ((0, F_pad - F_aug), (0, 0)))            # [F_pad,C]

    # xo = x[:, 1:, 0][:, L:] -> targets.  Matches torch `.long()` truncation;
    # assumes node indices are stored exactly in f32 (true up to 2^24).
    targets = x[:, L + 1:2 * L + 1, 0].astype(jnp.int32).reshape(N, 1)

    kernel = functools.partial(_ce_loss_kernel, N)

    partials = pl.pallas_call(
        kernel,
        out_shape=jax.ShapeDtypeStruct((num_tiles, 1, 128), jnp.float32),
        grid=(num_tiles,),
        in_specs=[
            pl.BlockSpec((TN, F_pad), lambda i: (i, 0)),
            pl.BlockSpec((F_pad, C), lambda i: (0, 0)),   # resident weights
            pl.BlockSpec((TN, C), lambda i: (i, 0)),      # full-dim class axis
            pl.BlockSpec((TN, 1), lambda i: (i, 0)),
        ],
        out_specs=pl.BlockSpec((1, 1, 128), lambda i: (i, 0, 0)),
        compiler_params=pltpu.CompilerParams(
            dimension_semantics=("parallel",),
            vmem_limit_bytes=_VMEM_LIMIT),
    )(xi, W_aug, mask2d, targets)

    # Mean over the true number of rows (F.cross_entropy default reduction).
    return jnp.sum(partials[:, 0, 0]) / jnp.float32(N)


def _reference_loss(x, masked_output, W, b, latent_len):
    """Pure-JAX f32 reference mirroring the PyTorch forward."""
    L = latent_len
    xi = x[:, :-1, :]
    xo = x[:, 1:, 0][:, L:]
    out = jnp.einsum("btf,fc->btc", xi, W,
                     preferred_element_type=jnp.float32) + b
    out = out[:, -L:, :] * masked_output                  # [B, L, C]
    logits = out.reshape(-1, out.shape[-1])               # [B*L, C]
    tgt = xo.reshape(-1).astype(jnp.int32)                # [B*L]
    lse = jax.scipy.special.logsumexp(logits, axis=-1)
    picked = jnp.take_along_axis(logits, tgt[:, None], axis=-1)[:, 0]
    return jnp.mean(lse - picked)


if __name__ == "__main__":
    key = jax.random.PRNGKey(0)
    k_idx, k_coord, k_w = jax.random.split(key, 3)

    B = 2            # batch
    L = 8            # latent_len == generate_len == number of node classes
    C = L            # classes
    F_ = 4           # features per token: [node_index, x, y, extra]
    S = 2 * L + 1    # sequence length (prompt + target tour + 1)

    # Deterministic synthetic input x: feature 0 holds integer node indices.
    node_idx = jax.random.randint(k_idx, (B, S), 0, C).astype(jnp.float32)
    coords = jax.random.normal(k_coord, (B, S, F_ - 1), dtype=jnp.float32)
    x = jnp.concatenate([node_idx[:, :, None], coords], axis=-1)     # [B,S,F]

    # masked_output: all-ones mask, as used by generate()/generate_for_RL().
    masked_output = jnp.ones((B, L, C), dtype=jnp.float32)

    # Deterministic "model" parameters (linear head over classes).
    W = jax.random.normal(k_w, (F_, C), dtype=jnp.float32) * 0.1
    b = jnp.zeros((1, C), dtype=jnp.float32)

    loss = autoregressive_forward_loss(x, masked_output, W, b, latent_len=L)
    loss = jax.block_until_ready(loss)

    ref = _reference_loss(x, masked_output, W, b, L)
    assert jnp.allclose(loss, ref, rtol=1e-3, atol=1e-3), (loss, ref)

    # TODO(synk): generate()/generate_for_RL()/generate_for_DPO()/best_tour_*
    # are host-side autoregressive / permutation-search loops with .item(),
    # multinomial sampling and prints; they are not kernelized here.
    print("KERNEL_OK")
</pallas_src>

<mosaic_0001>
module attributes {stable_mosaic.version = 11 : i64} {
  func.func @_ce_loss_kernel(%arg0: i32, %arg1: memref<8x8xf32, #tpu.memory_space<vmem>>, %arg2: memref<8x8xf32, #tpu.memory_space<vmem>>, %arg3: memref<8x8xf32, #tpu.memory_space<vmem>>, %arg4: memref<8x1xi32, #tpu.memory_space<vmem>>, %arg5: memref<1x1x128xf32, #tpu.memory_space<vmem>>) attributes {dimension_semantics = [#tpu.dimension_semantics<parallel>], iteration_bounds = array<i64: 2>, scalar_prefetch = 0 : i64, scratch_operands = 0 : i64, tpu.core_type = #tpu.core_type<tc>, window_params = [{transform_indices = @transform_0, window_bounds = array<i64: 8, 8>}, {pipeline_mode = #tpu.pipeline_mode<synchronous>, transform_indices = @transform_1, window_bounds = array<i64: 8, 8>}, {transform_indices = @transform_2, window_bounds = array<i64: 8, 8>}, {transform_indices = @transform_3, window_bounds = array<i64: 8, 1>}, {transform_indices = @transform_4, window_bounds = array<i64: 1, 1, 128>}]} {
    %c0 = arith.constant 0 : index
    %c0_0 = arith.constant 0 : index
    %0 = vector.load %arg1[%c0, %c0_0] : memref<8x8xf32, #tpu.memory_space<vmem>>, vector<8x8xf32>
    %c0_1 = arith.constant 0 : index
    %c0_2 = arith.constant 0 : index
    %1 = vector.load %arg2[%c0_1, %c0_2] : memref<8x8xf32, #tpu.memory_space<vmem>>, vector<8x8xf32>
    %cst = arith.constant dense<0.000000e+00> : vector<8x8xf32>
    %2 = tpu.matmul %0, %1, %cst {dimension_numbers = #tpu.dot_dimension_numbers<[1], [0], [0], [1], [0, 0, 1, 1], [], []>} : vector<8x8xf32>, vector<8x8xf32>, vector<8x8xf32> -> vector<8x8xf32>
    %c0_3 = arith.constant 0 : index
    %c0_4 = arith.constant 0 : index
    %3 = vector.load %arg3[%c0_3, %c0_4] : memref<8x8xf32, #tpu.memory_space<vmem>>, vector<8x8xf32>
    %4 = arith.mulf %2, %3 : vector<8x8xf32>
    %cst_5 = arith.constant dense<0xFF800000> : vector<8xf32>
    %5 = vector.multi_reduction <maximumf>, %4, %cst_5 [1] : vector<8x8xf32> to vector<8xf32>
    %6 = vector.shape_cast %5 : vector<8xf32> to vector<8x1xf32>
    %7 = vector.broadcast %6 : vector<8x1xf32> to vector<8x8xf32>
    %8 = arith.subf %4, %7 : vector<8x8xf32>
    %9 = math.exp %8 : vector<8x8xf32>
    %cst_6 = arith.constant dense<0.000000e+00> : vector<8xf32>
    %10 = vector.multi_reduction <add>, %9, %cst_6 [1] : vector<8x8xf32> to vector<8xf32>
    %11 = vector.shape_cast %10 : vector<8xf32> to vector<8x1xf32>
    %12 = math.log %11 : vector<8x1xf32>
    %13 = arith.addf %12, %6 : vector<8x1xf32>
    %14 = tpu.iota {dimensions = array<i32: 1>} : vector<8x8xi32>
    %c0_7 = arith.constant 0 : index
    %c0_8 = arith.constant 0 : index
    %15 = vector.load %arg4[%c0_7, %c0_8] : memref<8x1xi32, #tpu.memory_space<vmem>>, vector<8x1xi32>
    %16 = vector.broadcast %15 : vector<8x1xi32> to vector<8x8xi32>
    %17 = arith.cmpi eq, %14, %16 : vector<8x8xi32>
    %cst_9 = arith.constant 0.000000e+00 : f32
    %18 = vector.broadcast %cst_9 : f32 to vector<8x8xf32>
    %19 = arith.select %17, %4, %18 : vector<8x8xi1>, vector<8x8xf32>
    %cst_10 = arith.constant dense<0.000000e+00> : vector<8xf32>
    %20 = vector.multi_reduction <add>, %19, %cst_10 [1] : vector<8x8xf32> to vector<8xf32>
    %21 = vector.shape_cast %20 : vector<8xf32> to vector<8x1xf32>
    %22 = arith.subf %13, %21 : vector<8x1xf32>
    %c8_i32 = arith.constant 8 : i32
    %23 = arith.muli %arg0, %c8_i32 : i32
    %24 = tpu.iota {dimensions = array<i32: 0>} : vector<8x1xi32>
    %25 = vector.broadcast %23 : i32 to vector<8x1xi32>
    %26 = arith.addi %25, %24 : vector<8x1xi32>
    %c16_i32 = arith.constant 16 : i32
    %27 = vector.broadcast %c16_i32 : i32 to vector<8x1xi32>
    %28 = arith.cmpi slt, %26, %27 : vector<8x1xi32>
    %cst_11 = arith.constant 0.000000e+00 : f32
    %29 = vector.broadcast %cst_11 : f32 to vector<8x1xf32>
    %30 = arith.select %28, %22, %29 : vector<8x1xi1>, vector<8x1xf32>
    %31 = vector.shape_cast %30 : vector<8x1xf32> to vector<1x8x1xf32>
    %cst_12 = arith.constant dense<0.000000e+00> : vector<1xf32>
    %32 = vector.multi_reduction <add>, %31, %cst_12 [1, 2] : vector<1x8x1xf32> to vector<1xf32>
    %33 = vector.shape_cast %32 : vector<1xf32> to vector<1x1x1xf32>
    %34 = vector.extract %33[0, 0, 0] : f32 from vector<1x1x1xf32>
    %35 = vector.broadcast %34 : f32 to vector<1x1x128xf32>
    %c0_13 = arith.constant 0 : index
    %c0_14 = arith.constant 0 : index
    %c0_15 = arith.constant 0 : index
    %36 = vector.load %arg5[%c0_13, %c0_14, %c0_15] : memref<1x1x128xf32, #tpu.memory_space<vmem>>, vector<1x1x128xf32>
    tpu.vector_store %arg5[%c0_13, %c0_14, %c0_15], %35 {strides = array<i32>} : memref<1x1x128xf32, #tpu.memory_space<vmem>>, vector<1x1x128xf32>,
    return
  }
  func.func @transform_0(%arg0: i32) -> (i32, i32) {
    %c0_i32 = arith.constant 0 : i32
    %c0_i32_0 = arith.constant 0 : i32
    return %arg0, %c0_i32 : i32, i32
  }
  func.func @transform_1(%arg0: i32) -> (i32, i32) {
    %c0_i32 = arith.constant 0 : i32
    %c0_i32_0 = arith.constant 0 : i32
    %c0_i32_1 = arith.constant 0 : i32
    return %c0_i32, %c0_i32_0 : i32, i32
  }
  func.func @transform_2(%arg0: i32) -> (i32, i32) {
    %c0_i32 = arith.constant 0 : i32
    %c0_i32_0 = arith.constant 0 : i32
    return %arg0, %c0_i32 : i32, i32
  }
  func.func @transform_3(%arg0: i32) -> (i32, i32) {
    %c0_i32 = arith.constant 0 : i32
    %c0_i32_0 = arith.constant 0 : i32
    return %arg0, %c0_i32 : i32, i32
  }
  func.func @transform_4(%arg0: i32) -> (i32, i32, i32) {
    %c0_i32 = arith.constant 0 : i32
    %c0_i32_0 = arith.constant 0 : i32
    %c0_i32_1 = arith.constant 0 : i32
    return %arg0, %c0_i32, %c0_i32_0 : i32, i32, i32
  }
}

</mosaic_0001>

<bundles_post_ra>
// kernel: autoregressive_forward_loss.1
= control target key start
LH: loop header
LB: loop body
LE: loop exit
PB: predicated region body
PF: predicated region fallthrough
CT: control target
= control target key end

     0   :  { %s491_s15 = smov 0   ;;  %s530_s0 = inlined_call_operand.vmem [shape: f32[16,8], index: 0, kind: input, shape index: {}]   ;;  %s531_s1 = inlined_call_operand.vmem [shape: f32[8,8], index: 1, kind: input, shape index: {}]   ;;  %s532_s2 = inlined_call_operand.vmem [shape: f32[16,8], index: 2, kind: input, shape index: {}]   ;;  %s533_s3 = inlined_call_operand.vmem [shape: s32[16,1], index: 3, kind: input, shape index: {}]   ;;  %s534_s4 = inlined_call_operand.vmem [shape: f32[2,1,128], index: 4, kind: output, shape index: {}]  }
   0x1 LB: > { %s497_s16 = sadd.s32 4294967295, %s461_s15   ;;  %p422_p0 = scmp.ge.s32.totalorder %s461_s15, 1  ;;  %s461_s15 = sphi %s491_s15, %s14_s15  }
   0x2   : > { %p179_p1 = scmp.lt.s32.totalorder %s461_s15, 3 }
   0x4   : > { %p180_p2 = pnand %p422_p0, %p179_p1 }
   0x5   : > { %v226_v0 = vld [vmem:[%s531_s1] sm:$0xff] (!%p180_p2)  ;;  %p210_p3 = scmp.lt.s32.totalorder (!%p180_p2), %s497_s16, 1  ;;  %v463_v1 = vmov (!%p180_p2), 0.0   ;;  %vm464_vm0 = vmmov (!%p180_p2), 0   ;;  %vm227_vm1 = vcmask (!%p180_p2), 64512   ;;  %v465_v3 = vmov (!%p180_p2), 0  }
   0x6   : > { %183 = sbr.rel (%p180_p2) target bundleno = 758 (0x2f6), region = 36  ;;  %432 = vmatprep.subr.mxu0 (!%p180_p2), %v463_v1  ;;  %434 = vmatprep.mubr.msk.f32.mxu0 (!%p180_p2), %vm464_vm0, %v463_v1  ;;  %v315_v13 = vlaneseq (!%p180_p2)  ;;  %s427_s30 = sshll.u32 (!%p180_p2), %s497_s16, 3  ;;  %vm334_vm4 = vcmask (!%p180_p2), 7168  }
   0x7   : > { %433 = vmatpush3.msra.mxu0 (!%p180_p2), %v226_v0  ;;  %450 = vset.pattern.permute.xlu0 (!%p180_p2), %v465_v3  ;;  %v330_v22 = vstv (!%p180_p2), %s427_s30 }
   0x8   : > { %v316_v14 = vand.u32 (!%p180_p2), 127, %v315_v13  ;;  %v329_v21 = vshrl.u32 (!%p180_p2), %v315_v13, 7 }
   0xa   : > { %v331_v24 = vadd.s32 (!%p180_p2), %v330_v22, %v329_v21 }
   0xc   : > { %vm332_vm3 = vcmp.lt.s32.totalorder (!%p180_p2), %v331_v24, 16 }
   0xd   : > { %s506_s19 = scalar_select %p210_p3, %s497_s16, 1 }
   0xf   : > { %s423_s20 = sshll.u32 %s506_s19, 3  ;;  %s224_s7 = scalar_lea.vmem %s534_s4, %s506_s19 }
  0x10   : > { %s213_s23 = scalar_lea.vmem %s530_s0, %s423_s20  ;;  %s217_s26 = scalar_lea.vmem %s532_s2, %s423_s20 }
  0x11   : > { %v225_v2 = vld [vmem:[%s213_s23] sm:$0xff]  ;;  %s221_s29 = scalar_lea.vmem %s533_s3, %s423_s20 }
  0x12   : > { %435 = vmatmul.mubr.msk.f32.vlgmr.msra.gmra.mrb[0].mxu0 %vm227_vm1, %v225_v2  ;;  %v301_v4 = vld [vmem:[%s217_s26] sm:$0xff] }
  0x13   : > { %v317_v9 = vld [vmem:[%s221_s29] sm:$0xff] }
  0xe5   : > { %v297_v5 = vpop.f32.mrb[0].mxu0 }
  0xe6   : > { %v302_v6 = vmul.f32 %v301_v4, %v297_v5  ;;  %v436_v7 = vpop.f32.mrb[1].mxu0 }
  0xe8   : > { %v303_v8 = vsel %vm227_vm1, %v302_v6, -inf }
  0xe9   : > { %304 = vmax.xlane.f32.xlu0 %v303_v8 }
  0xff   : > { %319 = vperm.xlu0 %450, %v317_v9  }
 0x176   : > { %v305_v10 = vpop.xlane.xlu0 %304 }
 0x177   : > { %v306_v11 = vsub.f32 %v302_v6, %v305_v10 }
 0x179   : > { %v307_v12 = vmul.f32 1.442695, %v306_v11 }
 0x17b   : > { %451 = vpow2.f32 %v307_v12 }
 0x17e   : > { %v320_v15 = vpop.permute.xlu0 %319 }
 0x17f   : > { %vm321_vm2 = vcmp.eq.s32.totalorder %v316_v14, %v320_v15 }
 0x180   : > { %v322_v18 = vsel %vm321_vm2, %v302_v6, 0.0 }
 0x181   : > { %v323_v19 = vsel %vm227_vm1, %v322_v18, 0.0 }
 0x185   : > { %v452_v16 = vpop.eup %451 }
 0x186   : > { %v309_v17 = vsel %vm227_vm1, %v452_v16, 0.0 }
 0x187   : > { %310 = vadd.xlane.f32.xlu1 %v309_v17 }
 0x18b   : > { %324 = vadd.xlane.f32.xlu1 %v323_v19 }
 0x214   : > { %v311_v20 = vpop.xlane.xlu1 %310 }
 0x215   : > { %453 = vlog2.f32 %v311_v20 }
 0x218   : > { %v325_v27 = vpop.xlane.xlu1 %324 }
 0x21f   : > { %v454_v23 = vpop.eup %453 }
 0x220   : > { %v313_v25 = vmul.f32 0.6931472, %v454_v23 }
 0x222   : > { %v314_v26 = vadd.f32 %v313_v25, %v305_v10 }
 0x224   : > { %v326_v28 = vsub.f32 %v314_v26, %v325_v27 }
 0x226   : > { %v333_v29 = vsel %vm332_vm3, %v326_v28, 0.0 }
 0x227   : > { %v335_v30 = vsel %vm334_vm4, %v333_v29, 0.0 }
 0x228   : > { %336 = vadd.xlane.f32.xlu1 %v335_v30 }
 0x2b5   : > { %v337_v31 = vpop.xlane.xlu1 %336 }
 0x2b6   : > { %v338_v32 = vrot.slane %v337_v31, 4 }
 0x2b8   : > { %v339_v33 = vadd.f32 %v338_v32, %v337_v31 }
 0x2ba   : > { %v340_v34 = vrot.slane %v339_v33, 2 }
 0x2bc   : > { %v341_v35 = vadd.f32 %v340_v34, %v339_v33 }
 0x2be   : > { %v342_v36 = vrot.slane %v341_v35, 1 }
 0x2c0   : > { %v343_v37 = vadd.f32 %v342_v36, %v341_v35 }
 0x2c2   : > { %437 = vpush %v343_v37 }
 0x2f3   : > { %s438_s8 = spop %437 }
 0x2f4   : > { %v345_v38 = vstv %s438_s8 }
 0x2f5   : > { %346 = vst [vmem:[%s224_s7] sm:$0x1] %v345_v38 }
 0x2f6 PF: > { %s14_s15 = sadd.s32 1, %s461_s15  }
 0x2f7   : > { %p11_p4 = scmp.ge.s32.totalorder %s14_s15, 4  }
 0x2f9   :  { %13 = sbr.rel (!%p11_p4) target bundleno = 1 (0x1), region = 72 }

</bundles_post_ra>
